<compile_context>
chip_gen: v7x
topology: tpu7x:2x2x1
jax: 0.10.0
libtpu: 0.0.40
codegen_flags: <defaults>
</compile_context>

<pallas_src>
import functools

import jax
import jax.numpy as jnp
from jax.experimental import pallas as pl
from jax.experimental.pallas import tpu as pltpu


def _round_up(a, m):
    return (a + m - 1) // m * m


def _tensorcores_per_chip():
    """Best-effort TensorCores-per-chip (v5e/v6e: 1, v7x: 2)."""
    try:
        info = pltpu.get_tpu_info()
        for name in ("num_cores", "num_tensorcores", "tensorcore_count",
                     "cores_per_chip", "core_count"):
            v = getattr(info, name, None)
            if isinstance(v, int) and 1 <= v <= 4:
                return v
    except Exception:
        pass
    # Conservative default: assume 2 cores (v7x).  On 1-core parts this only
    # adds a handful of ~0.35us grid steps for mid-sized inputs.
    return 2


# -----------------------------------------------------------------------------
# Fast path: lane-folded layout, one (p*H*W)-lane row per output depth slice.
# Row layout: [depth i (p), ho (Ho), hp (p), wo (Wo), wi (p)].
# -----------------------------------------------------------------------------
def _maxpool3d_lane_kernel(x_ref, o_ref, *, p, H, W, Ho, Wo):
    # x_ref: (Tb, p*H*W),  o_ref: (Tb, Ho, Wo)
    HW = H * W
    tb = x_ref.shape[0]

    # 1) Depth window: p contiguous (and, for H*W % 128 == 0, vreg-aligned)
    #    lane slices; each input vreg loaded exactly once, pure VPU maxima.
    acc = x_ref[:, 0:HW]
    for i in range(1, p):
        acc = jnp.maximum(acc, x_ref[:, i * HW:(i + 1) * HW])

    # 2) Height window: fold ho out of the lane axis (touches 1/p of the
    #    input), then reduce the p height rows via contiguous W-wide slices.
    acc = acc.reshape(tb, Ho, p * W)
    h = acc[:, :, 0:W]
    for hp in range(1, p):
        h = jnp.maximum(h, acc[:, :, hp * W:(hp + 1) * W])

    # 3) Width window last: its p elements are lane-adjacent; only the
    #    1/p^2-sized intermediate sees this minor-axis relayout.
    o_ref[...] = jnp.max(h.reshape(tb, Ho, Wo, p), axis=-1)


# -----------------------------------------------------------------------------
# Fallback path (H*W not a multiple of 128): original (B, p*H, W) layout with
# sublane-strided depth/height reduction.  Correct for any divisible shape.
# -----------------------------------------------------------------------------
def _maxpool3d_sublane_kernel(x_ref, o_ref, *, p, H, Ho, Wo):
    # x_ref: (Tb, p*H, W),  o_ref: (Tb, Ho, Wo)
    acc = None
    for i in range(p):          # depth-window offset
        for j in range(p):      # height-window offset
            slab = x_ref[:, pl.ds(i * H + j, Ho, p), :]
            acc = slab if acc is None else jnp.maximum(acc, slab)
    tb = acc.shape[0]
    o_ref[...] = jnp.max(acc.reshape(tb, Ho, Wo, p), axis=-1)


def pool3d_block(x, pool_size, *, num_cores=None,
                 vmem_block_budget_bytes=8 * 1024 * 1024):
    """F.max_pool3d(x, kernel_size=pool_size, stride=pool_size) for NCDHW input."""
    p = int(pool_size)
    N, C, D, H, W = x.shape
    assert D % p == 0 and H % p == 0 and W % p == 0, \
        "spatial dims must be divisible by pool_size"
    Do, Ho, Wo = D // p, H // p, W // p
    B = N * C * Do
    itemsize = x.dtype.itemsize
    sub_rows = max(8, 8 * (4 // max(1, itemsize)))   # f32:8, bf16:16, int8:32
    LANE = 128

    use_lane_fold = (H * W) % LANE == 0

    # ---- padded per-slice VMEM footprint (input + output rows) -------------
    out_slice = _round_up(Ho, sub_rows) * _round_up(Wo, LANE) * itemsize
    if use_lane_fold:
        in_slice = _round_up(p * H * W, LANE) * itemsize
    else:
        in_slice = _round_up(p * H, sub_rows) * _round_up(W, LANE) * itemsize
    per_slice = in_slice + out_slice

    # ---- slices per grid step ------------------------------------------------
    if num_cores is None:
        num_cores = _tensorcores_per_chip()
    target_steps = 4 * max(1, int(num_cores))        # >= 4 pipelined steps/core

    # Double-buffered (input + output) blocks must fit the budget: well under
    # v5e's 16 MiB scoped-VMEM default and v7x's 64 MiB physical VMEM.
    tb_budget = max(1, vmem_block_budget_bytes // (2 * per_slice))
    tb_steps = max(1, B // target_steps)
    tb = max(1, min(B, tb_budget, tb_steps))
    if use_lane_fold and tb < B:
        # 2-D block: the sublane dim must be a multiple of 8 (or the full axis).
        tb = max(8, (tb // 8) * 8) if B >= 8 else B
    tb = min(tb, B)
    grid = (pl.cdiv(B, tb),)

    # Only raise the scoped-VMEM limit if a single (padded, double-buffered)
    # block can't fit the per-chip defaults (degenerate huge-slice case).
    need = 2 * tb * per_slice + (4 << 20)
    cp_kwargs = dict(dimension_semantics=("parallel",))
    if need > (14 << 20):
        cp_kwargs["vmem_limit_bytes"] = int(min(need, 40 << 20))
    compiler_params = pltpu.CompilerParams(**cp_kwargs)

    if use_lane_fold:
        # Free row-major reshape: one row per output depth slice, holding its
        # whole p x H x W pooling source contiguously on the lane axis.
        x_in = x.reshape(B, p * H * W)
        kernel = functools.partial(_maxpool3d_lane_kernel,
                                   p=p, H=H, W=W, Ho=Ho, Wo=Wo)
        in_spec = pl.BlockSpec((tb, p * H * W), lambda b: (b, 0))
    else:
        # Fallback layout: W stays the (possibly sparse) lane axis.
        x_in = x.reshape(B, p * H, W)
        kernel = functools.partial(_maxpool3d_sublane_kernel,
                                   p=p, H=H, Ho=Ho, Wo=Wo)
        in_spec = pl.BlockSpec((tb, p * H, W), lambda b: (b, 0, 0))

    out = pl.pallas_call(
        kernel,
        out_shape=jax.ShapeDtypeStruct((B, Ho, Wo), x.dtype),
        grid=grid,
        in_specs=[in_spec],
        out_specs=pl.BlockSpec((tb, Ho, Wo), lambda b: (b, 0, 0)),
        compiler_params=compiler_params,
    )(x_in)

    return out.reshape(N, C, Do, Ho, Wo)


if __name__ == "__main__":
    # Pool3DBlock has no learnable parameters; only pool_size from __init__.
    pool_size = 2
    N, C, D, H, W = 2, 4, 8, 16, 16

    key = jax.random.PRNGKey(0)
    x = jax.random.normal(key, (N, C, D, H, W), dtype=jnp.float32)

    y = jax.block_until_ready(pool3d_block(x, pool_size))

    # Pure-JAX reference for non-overlapping max-pool semantics.
    ref = x.reshape(N, C, D // pool_size, pool_size,
                    H // pool_size, pool_size,
                    W // pool_size, pool_size).max(axis=(3, 5, 7))

    assert y.shape == (N, C, D // pool_size, H // pool_size, W // pool_size)
    assert y.dtype == x.dtype
    assert jnp.allclose(y, ref), "Pallas max_pool3d mismatch vs reference"

    print("KERNEL_OK")
</pallas_src>

<mosaic_0001>
module attributes {stable_mosaic.version = 11 : i64} {
  func.func @_maxpool3d_lane_kernel(%arg0: i32, %arg1: memref<8x512xf32, #tpu.memory_space<vmem>>, %arg2: memref<8x8x8xf32, #tpu.memory_space<vmem>>) attributes {dimension_semantics = [#tpu.dimension_semantics<parallel>], iteration_bounds = array<i64: 4>, scalar_prefetch = 0 : i64, scratch_operands = 0 : i64, tpu.core_type = #tpu.core_type<tc>, window_params = [{transform_indices = @transform_0, window_bounds = array<i64: 8, 512>}, {transform_indices = @transform_1, window_bounds = array<i64: 8, 8, 8>}]} {
    %c0 = arith.constant 0 : index
    %c0_0 = arith.constant 0 : index
    %0 = vector.load %arg1[%c0, %c0_0] : memref<8x512xf32, #tpu.memory_space<vmem>>, vector<8x256xf32>
    %c0_1 = arith.constant 0 : index
    %c256 = arith.constant 256 : index
    %1 = vector.load %arg1[%c0_1, %c256] : memref<8x512xf32, #tpu.memory_space<vmem>>, vector<8x256xf32>
    %2 = arith.maximumf %0, %1 : vector<8x256xf32>
    %3 = vector.shape_cast %2 : vector<8x256xf32> to vector<8x8x32xf32>
    %4 = vector.extract_strided_slice %3 {offsets = [0, 0, 0], sizes = [8, 8, 16], strides = [1, 1, 1]} : vector<8x8x32xf32> to vector<8x8x16xf32>
    %5 = vector.extract_strided_slice %3 {offsets = [0, 0, 16], sizes = [8, 8, 16], strides = [1, 1, 1]} : vector<8x8x32xf32> to vector<8x8x16xf32>
    %6 = arith.maximumf %4, %5 : vector<8x8x16xf32>
    %7 = vector.shape_cast %6 : vector<8x8x16xf32> to vector<8x8x8x2xf32>
    %cst = arith.constant dense<0xFF800000> : vector<8x8x8xf32>
    %8 = vector.multi_reduction <maximumf>, %7, %cst [3] : vector<8x8x8x2xf32> to vector<8x8x8xf32>
    %c0_2 = arith.constant 0 : index
    %c0_3 = arith.constant 0 : index
    %c0_4 = arith.constant 0 : index
    %9 = vector.load %arg2[%c0_2, %c0_3, %c0_4] : memref<8x8x8xf32, #tpu.memory_space<vmem>>, vector<8x8x8xf32>
    tpu.vector_store %arg2[%c0_2, %c0_3, %c0_4], %8 {strides = array<i32>} : memref<8x8x8xf32, #tpu.memory_space<vmem>>, vector<8x8x8xf32>,
    return
  }
  func.func @transform_0(%arg0: i32) -> (i32, i32) {
    %c0_i32 = arith.constant 0 : i32
    %c0_i32_0 = arith.constant 0 : i32
    return %arg0, %c0_i32 : i32, i32
  }
  func.func @transform_1(%arg0: i32) -> (i32, i32, i32) {
    %c0_i32 = arith.constant 0 : i32
    %c0_i32_0 = arith.constant 0 : i32
    %c0_i32_1 = arith.constant 0 : i32
    return %arg0, %c0_i32, %c0_i32_0 : i32, i32, i32
  }
}

</mosaic_0001>

<bundles_post_ra>
// kernel: tpu_custom_call.1
= control target key start
LH: loop header
LB: loop body
LE: loop exit
PB: predicated region body
PF: predicated region fallthrough
CT: control target
= control target key end

     0   :  { %6 = vsyncpa [#allocation3], 0  ;;  %s3737_s0 = inlined_call_operand.hbm [shape: f32[32,512], index: 0, kind: input, shape index: {}]   ;;  %s3738_s1 = inlined_call_operand.vmem [shape: f32[32,8,8], index: 1, kind: output, shape index: {}]  }
   0x1   :  { %8 = vsyncpa [#allocation3 + $0x1], 0  ;;  %s2420_s6 = smov 0   ;;  %s2422_s7 = smov 0  }
   0x2   :  { %s2424_s8 = smov 0   ;;  %s2426_s9 = smov 0  }
   0x3 LB: > { %s2264_s10 = sadd.s32 4294967295, %s2394_s9   ;;  %s2440_s11 = sadd.s32 1, %s2394_s9   ;;  %s2394_s9 = sphi %s2426_s9, %s3859_s9   ;;  %s2390_s8 = sphi %s2424_s8, %s3858_s8   ;;  %s2386_s7 = sphi %s2422_s7, %s3857_s7   ;;  %s2382_s6 = sphi %s2420_s6, %s3856_s6  }
   0x4   : > { %s18_s12 = ssub.s32 %s2394_s9, %s2440_s11  ;;  %s21_s13 = sadd.s32 1, %s2390_s8 }
   0x5   : > { %p19_p0 = scmp.eq.s32.totalorder %s18_s12, 0  ;;  %p28_p1 = scmp.ne.s32.totalorder %s2390_s8, %s2386_s7 }
   0x6   : > { %p29_p2 = scmp.eq.s32.totalorder %s2394_s9, 0  ;;  %p34_p3 = scmp.ne.s32.totalorder %s2386_s7, %s2382_s6 }
   0x7   : > { %s2450_s14 = scalar_select %p19_p0, %s2390_s8, %s21_s13  }
   0x8   : > { %p30_p4 = por %p29_p2, %p28_p1  ;;  %p35_p5 = scmp.eq.s32.totalorder %s2264_s10, 0 }
   0x9   : > { %p2284_p6 = scmp.lt.s32.totalorder %s2394_s9, 4  ;;  %s84_s16 = sand.u32 1, %s2390_s8  }
   0xa   : > { %p2455_p7 = por %p35_p5, %p34_p3  ;;  %s2268_s17 = sshll.u32 %s84_s16, 5 }
   0xb   : > { %s2277_s18 = sshll.u32 %s2394_s9, 9  ;;  %s88_s22 = scalar_lea.vmem [#allocation2], %s2268_s17 }
   0xc   : > { %s2464_s21 = scalar_lea.hbm %s3737_s0, %s2277_s18  ;;  %s96_s23 = sshll.u32 %s88_s22, 4  ;;  %s2466_s23 = int_to_ptr.vmem [resolvable:$true] %s96_s23 }
   0xd   : > { %p2468_p8 = pnand %p2284_p6, %p30_p4  ;;  %s85_s25 = scalar_lea.sflag [#allocation3], %s84_s16 }
   0xe   : > { %s2330_s26 = scalar_lea.hbm %s2464_s21, 512  ;;  %s2335_s29 = scalar_lea.hbm %s3737_s0, 2048 }
   0xf   : > { %p2331_p11 = scmp.ne.s32.totalorder %s2464_s21, %s2330_s26  ;;  %p2332_p12 = pneg %p2468_p8 }
  0x10   : > { %p2336_p1 = scmp.lt.u32.totalorder %s2464_s21, %s3737_s0  ;;  %p2337_p2 = scmp.lt.u32.totalorder %s2335_s29, %s2330_s26 }
  0x11   : > { %p2333_p13 = pnand %p2332_p12, %p2331_p11  ;;  %p2339_p4 = scmp.lt.u32.totalorder %s2330_s26, %s2464_s21 }
  0x12   : > { %p2338_p3 = por %p2337_p2, %p2336_p1 }
  0x13   : > { %p2334_p0 = pneg %p2333_p13 }
  0x14   : > { %p2340_p5 = por %p2339_p4, %p2338_p3 }
  0x16   : > { %p2341_p6 = pnand %p2340_p5, %p2334_p0 }
  0x18   : > { %2344 = shalt.err (!%p2341_p6)
}
  0x19   : > { %s2345_s3 = scalar_lea.vmem %s2466_s23, 512  ;;  %s2396_s4 = smov [#allocation2]  }
  0x1a   : > { %p2346_p11 = scmp.ne.s32.totalorder %s2466_s23, %s2345_s3  ;;  %s2350_s5 = sshll.u32 %s2396_s4, 4  ;;  %s2351_s5 = int_to_ptr.vmem [resolvable:$false] %s2350_s5 }
  0x1b   : > { %s2352_s6 = scalar_lea.vmem %s2351_s5, 1024  ;;  %p2353_p10 = scmp.lt.s32.totalorder %s2466_s23, %s2351_s5 }
  0x1c   : > { %p2348_p13 = pnand %p2346_p11, %p2332_p12  ;;  %p2354_p1 = scmp.lt.s32.totalorder %s2352_s6, %s2345_s3 }
  0x1e   : > { %p2349_p9 = pneg %p2348_p13  ;;  %p2355_p2 = por %p2354_p1, %p2353_p10 }
  0x20   : > { %p2356_p3 = pnand %p2355_p2, %p2349_p9 }
  0x22   : > { %2359 = shalt.err (!%p2356_p3)
}
  0x23   : > { %2283 = dma.hbm_to_vmem [thread:$0]  (!%p2468_p8), %s2464_s21, 512, %s2466_s23, %s85_s25  }
  0x24   : > { %p3765_p0 = scmp.lt.s32.totalorder %s2394_s9, 5  ;;  %p3766_p4 = scmp.ge.s32.totalorder %s2394_s9, 1 }
  0x26   : > { %p102_p12 = pnand %p3766_p4, %p3765_p0 }
  0x28   : > { %105 = sbr.rel (%p102_p12) target bundleno = 809 (0x329), region = 24 }
  0x2f   : > { %s107_s12 = sand.u32 1, %s2386_s7  }
  0x30   : > { %s2272_s13 = sshll.u32 %s107_s12, 5  ;;  %s108_s16 = scalar_lea.sflag [#allocation3], %s107_s12 }
  0x31   : > { %s111_s17 = scalar_lea.vmem [#allocation2], %s2272_s13 }
  0x32   : > { %2377 = dma.done.wait (%p2455_p7), %s108_s16, 512  }
  0x33   : > { %2379 = vsyncadd (%p2455_p7), %s108_s16, 4294966784  ;;  %v136_v0 = vld [vmem:[%s111_s17] sm:$0xff]  ;;  %v138_v1 = vld [vmem:[%s111_s17 + $0x10] sm:$0xff]  ;;  %s2397_s18 = smov 32   ;;  %s2398_s19 = smov 96   ;;  %v3739_v8 = vlaneseq  ;;  %vm1602_vm0 = vcmask 15360  }
  0x34   : > { %v137_v2 = vld [vmem:[%s111_s17 + $0x8] sm:$0xff]  ;;  %v140_v3 = vmax.f32 %v136_v0, %v138_v1  ;;  %v139_v4 = vld [vmem:[%s111_s17 + $0x18] sm:$0xff]  ;;  %s2399_s20 = smov 64   ;;  %v2400_v6 = vmov 1983009808   ;;  %s2402_s15 = smov 112  }
  0x35   : > { %v141_v5 = vmax.f32 %v137_v2, %v139_v4  ;;  %v165_v7 = vunpack.c.l.s4 %v2400_v6  ;;  %v2509_v12 = vshrl.u32 %v3739_v8, 7  ;;  %v2401_v13 = vmov 1934713408   ;;  %s2403_s21 = smov 126   ;;  %s2404_s22 = smov 124  }
  0x36   : > { %149 = vrot.lane.b32.xlu1 %v140_v3, %s2397_s18  ;;  %143 = vrot.lane.b32.xlu0 %v140_v3, %s2398_s19  ;;  %v229_v14 = vunpack.c.l.s4 %v2401_v13  ;;  %s2405_s23 = smov 122   ;;  %s2406_s24 = smov 120   ;;  %vm2117_vm1 = vcmask 1041409   ;;  %vm2119_vm2 = vcmask 1042434   ;;  %vm2121_vm3 = vcmask 1043459  }
  0x37   : > { %v166_v11 = vunpack.c.0.s8 %v165_v7  ;;  %3767 = vst [vmem:[#allocation5_spill] sm:$0xff] %v2509_v12  ;;  %s2407_s25 = smov 118   ;;  %s2408_s26 = smov 116   ;;  %vm2123_vm4 = vcmask 1044484   ;;  %vm2125_vm5 = vcmask 1045509   ;;  %vm2127_vm6 = vcmask 1046534  }
  0x38   : > { %v230_v20 = vunpack.c.0.s8 %v229_v14  ;;  %s2409_s27 = smov 114   ;;  %s2273_s28 = sshll.u32 %s2264_s10, 3  ;;  %vm2129_vm7 = vcmask 1047559   ;;  %vm2188_vm8 = vcmask 64512  }
  0x39   : > { %v2512_v17 = vsub.s32 %v166_v11, %v2509_v12  ;;  %p131_p7 = scmp.lt.s32.totalorder %s2273_s28, 31 }
  0x3a   : > { %153 = vrot.lane.b32.xlu1 %v141_v5, %s2398_s19  ;;  %146 = vrot.lane.b32.xlu0 %v140_v3, %s2399_s20  ;;  %v2517_v29 = vsub.s32 %v230_v20, %v2509_v12 }
  0x3b   : > { %s3861_s28 = smov (!%p131_p7, %s2273_s28), 31 }
  0x3c   : > { %s2274_s9 = sshll.u32 %s3861_s28, 3 }
  0x3d   : > { %s3547_s30 = scalar_lea.vmem %s3738_s1, %s2274_s9 }
  0x3e   : > { %159 = vrot.lane.b32.xlu1 %v141_v5, %s2397_s18  ;;  %156 = vrot.lane.b32.xlu0 %v141_v5, %s2399_s20 }
  0xa8   : > { %v150_v9 = vpop.permute.xlu1 %149  ;;  %v144_v10 = vpop.permute.xlu0 %143 }
  0xa9   : > { %v178_v18 = vcombine.low %v144_v10, %v150_v9  ;;  %v179_v34 = vcombine.high %v144_v10, %v150_v9 }
  0xab   : > { %v186_v24 = vrot.slane %v178_v18, %v2512_v17  ;;  %v193_v43 = vrot.slane %v179_v34, %v2512_v17 }
  0xac   : > { %v154_v15 = vpop.permute.xlu1 %153  ;;  %v147_v16 = vpop.permute.xlu0 %146 }
  0xad   : > { %v162_v19 = vcombine.low %v140_v3, %v147_v16  ;;  %v163_v30 = vcombine.high %v140_v3, %v147_v16 }
  0xaf   : > { %v170_v21 = vrot.slane %v162_v19, %v2512_v17  ;;  %v177_v39 = vrot.slane %v163_v30, %v2512_v17 }
  0xb0   : > { %v160_v22 = vpop.permute.xlu1 %159  ;;  %v157_v23 = vpop.permute.xlu0 %156 }
  0xb1   : > { %v210_v25 = vcombine.low %v154_v15, %v160_v22  ;;  %v211_v26 = vcombine.high %v154_v15, %v160_v22  ;;  %v194_v27 = vcombine.low %v141_v5, %v157_v23  ;;  %v195_v28 = vcombine.high %v141_v5, %v157_v23 }
  0xb2   : > { %v226_v31 = vcombine.low %v170_v21, %v186_v24  ;;  %v227_v40 = vcombine.high %v170_v21, %v186_v24  ;;  %v242_v48 = vcombine.low %v177_v39, %v193_v43  ;;  %v243_v54 = vcombine.high %v177_v39, %v193_v43 }
  0xb3   : > { %v218_v32 = vrot.slane %v210_v25, %v2512_v17  ;;  %v202_v33 = vrot.slane %v194_v27, %v2512_v17  ;;  %v225_v35 = vrot.slane %v211_v26, %v2512_v17  ;;  %v209_v36 = vrot.slane %v195_v28, %v2512_v17 }
  0xb4   : > { %v234_v41 = vrot.slane %v226_v31, %v2517_v29  ;;  %v241_v49 = vrot.slane %v227_v40, %v2517_v29  ;;  %v250_v55 = vrot.slane %v242_v48, %v2517_v29  ;;  %v257_v59 = vrot.slane %v243_v54, %v2517_v29 }
  0xb5   : > { %v258_v37 = vcombine.low %v202_v33, %v218_v32  ;;  %v259_v38 = vcombine.high %v202_v33, %v218_v32  ;;  %v274_v44 = vcombine.low %v209_v36, %v225_v35  ;;  %v275_v50 = vcombine.high %v209_v36, %v225_v35 }
  0xb7   : > { %v266_v42 = vrot.slane %v258_v37, %v2517_v29  ;;  %v273_v47 = vrot.slane %v259_v38, %v2517_v29  ;;  %v282_v53 = vrot.slane %v274_v44, %v2517_v29  ;;  %v289_v58 = vrot.slane %v275_v50, %v2517_v29 }
  0xb9   : > { %v291_v45 = vcombine.high %v234_v41, %v266_v42  ;;  %v290_v46 = vcombine.low %v234_v41, %v266_v42  ;;  %v293_v51 = vcombine.high %v241_v49, %v273_v47  ;;  %v292_v52 = vcombine.low %v241_v49, %v273_v47 }
  0xba   : > { %v295_v56 = vcombine.high %v250_v55, %v282_v53  ;;  %v294_v57 = vcombine.low %v250_v55, %v282_v53  ;;  %v297_v60 = vcombine.high %v257_v59, %v289_v58  ;;  %v296_v61 = vcombine.low %v257_v59, %v289_v58 }
  0xbb   : > { %308 = vrot.lane.b32.xlu1 %v291_v45, %s2402_s15  ;;  %306 = vrot.lane.b32.xlu0 %v290_v46, %s2402_s15 }
  0xbf   : > { %312 = vrot.lane.b32.xlu1 %v293_v51, %s2402_s15  ;;  %310 = vrot.lane.b32.xlu0 %v292_v52, %s2402_s15 }
  0xc3   : > { %316 = vrot.lane.b32.xlu1 %v295_v56, %s2402_s15  ;;  %314 = vrot.lane.b32.xlu0 %v294_v57, %s2402_s15 }
  0xc7   : > { %320 = vrot.lane.b32.xlu1 %v297_v60, %s2402_s15  ;;  %318 = vrot.lane.b32.xlu0 %v296_v61, %s2402_s15 }
 0x12d   : > { %v309_v62 = vpop.permute.xlu1 %308  ;;  %v307_v63 = vpop.permute.xlu0 %306 }
 0x12e   : > { %v2533_v0 = vmax.f32 %v291_v45, %v309_v62  ;;  %v2535_v1 = vmax.f32 %v290_v46, %v307_v63 }
 0x130   : > { %348 = vrot.lane.b32.xlu1 %v2533_v0, %s2403_s21  ;;  %346 = vrot.lane.b32.xlu0 %v2535_v1, %s2403_s21 }
 0x131   : > { %v313_v2 = vpop.permute.xlu1 %312  ;;  %v311_v3 = vpop.permute.xlu0 %310 }
 0x132   : > { %v2539_v4 = vmax.f32 %v293_v51, %v313_v2  ;;  %v2541_v5 = vmax.f32 %v292_v52, %v311_v3 }
 0x134   : > { %352 = vrot.lane.b32.xlu1 %v2539_v4, %s2403_s21  ;;  %350 = vrot.lane.b32.xlu0 %v2541_v5, %s2403_s21 }
 0x135   : > { %v317_v6 = vpop.permute.xlu1 %316  ;;  %v315_v7 = vpop.permute.xlu0 %314 }
 0x136   : > { %v2545_v9 = vmax.f32 %v295_v56, %v317_v6  ;;  %v2547_v10 = vmax.f32 %v294_v57, %v315_v7 }
 0x138   : > { %356 = vrot.lane.b32.xlu1 %v2545_v9, %s2403_s21  ;;  %354 = vrot.lane.b32.xlu0 %v2547_v10, %s2403_s21 }
 0x139   : > { %v321_v11 = vpop.permute.xlu1 %320  ;;  %v319_v13 = vpop.permute.xlu0 %318 }
 0x13a   : > { %v2551_v14 = vmax.f32 %v297_v60, %v321_v11  ;;  %v2553_v15 = vmax.f32 %v296_v61, %v319_v13 }
 0x13c   : > { %360 = vrot.lane.b32.xlu1 %v2551_v14, %s2403_s21  ;;  %358 = vrot.lane.b32.xlu0 %v2553_v15, %s2403_s21 }
 0x140   : > { %372 = vrot.lane.b32.xlu1 %v2533_v0, %s2404_s22  ;;  %370 = vrot.lane.b32.xlu0 %v2535_v1, %s2404_s22 }
 0x144   : > { %376 = vrot.lane.b32.xlu1 %v2539_v4, %s2404_s22  ;;  %374 = vrot.lane.b32.xlu0 %v2541_v5, %s2404_s22 }
 0x148   : > { %380 = vrot.lane.b32.xlu1 %v2545_v9, %s2404_s22  ;;  %378 = vrot.lane.b32.xlu0 %v2547_v10, %s2404_s22 }
 0x14c   : > { %384 = vrot.lane.b32.xlu1 %v2551_v14, %s2404_s22  ;;  %382 = vrot.lane.b32.xlu0 %v2553_v15, %s2404_s22 }
 0x150   : > { %396 = vrot.lane.b32.xlu1 %v2533_v0, %s2405_s23  ;;  %394 = vrot.lane.b32.xlu0 %v2535_v1, %s2405_s23 }
 0x154   : > { %400 = vrot.lane.b32.xlu1 %v2539_v4, %s2405_s23  ;;  %398 = vrot.lane.b32.xlu0 %v2541_v5, %s2405_s23 }
 0x158   : > { %404 = vrot.lane.b32.xlu1 %v2545_v9, %s2405_s23  ;;  %402 = vrot.lane.b32.xlu0 %v2547_v10, %s2405_s23 }
 0x15c   : > { %408 = vrot.lane.b32.xlu1 %v2551_v14, %s2405_s23  ;;  %406 = vrot.lane.b32.xlu0 %v2553_v15, %s2405_s23 }
 0x160   : > { %420 = vrot.lane.b32.xlu1 %v2533_v0, %s2406_s24  ;;  %418 = vrot.lane.b32.xlu0 %v2535_v1, %s2406_s24 }
 0x164   : > { %424 = vrot.lane.b32.xlu1 %v2539_v4, %s2406_s24  ;;  %422 = vrot.lane.b32.xlu0 %v2541_v5, %s2406_s24 }
 0x168   : > { %428 = vrot.lane.b32.xlu1 %v2545_v9, %s2406_s24  ;;  %426 = vrot.lane.b32.xlu0 %v2547_v10, %s2406_s24 }
 0x16c   : > { %432 = vrot.lane.b32.xlu1 %v2551_v14, %s2406_s24  ;;  %430 = vrot.lane.b32.xlu0 %v2553_v15, %s2406_s24 }
 0x170   : > { %444 = vrot.lane.b32.xlu1 %v2533_v0, %s2407_s25  ;;  %442 = vrot.lane.b32.xlu0 %v2535_v1, %s2407_s25 }
 0x174   : > { %448 = vrot.lane.b32.xlu1 %v2539_v4, %s2407_s25  ;;  %446 = vrot.lane.b32.xlu0 %v2541_v5, %s2407_s25 }
 0x178   : > { %452 = vrot.lane.b32.xlu1 %v2545_v9, %s2407_s25  ;;  %450 = vrot.lane.b32.xlu0 %v2547_v10, %s2407_s25 }
 0x17c   : > { %456 = vrot.lane.b32.xlu1 %v2551_v14, %s2407_s25  ;;  %454 = vrot.lane.b32.xlu0 %v2553_v15, %s2407_s25 }
 0x180   : > { %468 = vrot.lane.b32.xlu1 %v2533_v0, %s2408_s26  ;;  %466 = vrot.lane.b32.xlu0 %v2535_v1, %s2408_s26 }
 0x184   : > { %472 = vrot.lane.b32.xlu1 %v2539_v4, %s2408_s26  ;;  %470 = vrot.lane.b32.xlu0 %v2541_v5, %s2408_s26 }
 0x188   : > { %476 = vrot.lane.b32.xlu1 %v2545_v9, %s2408_s26  ;;  %474 = vrot.lane.b32.xlu0 %v2547_v10, %s2408_s26 }
 0x18c   : > { %480 = vrot.lane.b32.xlu1 %v2551_v14, %s2408_s26  ;;  %478 = vrot.lane.b32.xlu0 %v2553_v15, %s2408_s26 }
 0x190   : > { %492 = vrot.lane.b32.xlu1 %v2533_v0, %s2409_s27  ;;  %490 = vrot.lane.b32.xlu0 %v2535_v1, %s2409_s27 }
 0x194   : > { %496 = vrot.lane.b32.xlu1 %v2539_v4, %s2409_s27  ;;  %494 = vrot.lane.b32.xlu0 %v2541_v5, %s2409_s27 }
 0x198   : > { %500 = vrot.lane.b32.xlu1 %v2545_v9, %s2409_s27  ;;  %498 = vrot.lane.b32.xlu0 %v2547_v10, %s2409_s27 }
 0x19c   : > { %504 = vrot.lane.b32.xlu1 %v2551_v14, %s2409_s27  ;;  %502 = vrot.lane.b32.xlu0 %v2553_v15, %s2409_s27 }
 0x1a2   : > { %v2605_v16 = vpop.permute.xlu1 %348  ;;  %v2607_v18 = vpop.permute.xlu0 %346 }
 0x1a6   : > { %v2609_v19 = vpop.permute.xlu1 %352  ;;  %v2611_v20 = vpop.permute.xlu0 %350 }
 0x1aa   : > { %v2613_v21 = vpop.permute.xlu1 %356  ;;  %v2615_v22 = vpop.permute.xlu0 %354 }
 0x1ae   : > { %v2617_v23 = vpop.permute.xlu1 %360  ;;  %v2619_v24 = vpop.permute.xlu0 %358 }
 0x1b2   : > { %v373_v25 = vpop.permute.xlu1 %372  ;;  %v371_v26 = vpop.permute.xlu0 %370 }
 0x1b3   : > { %v650_v50 = vcombine.low %v2533_v0, %v373_v25  ;;  %v651_v51 = vcombine.high %v2533_v0, %v373_v25  ;;  %v514_v52 = vcombine.low %v2535_v1, %v371_v26  ;;  %v515_v53 = vcombine.high %v2535_v1, %v371_v26 }
 0x1b5   : > { %v2667_v61 = vrot.slane %v650_v50, %v2512_v17  ;;  %v2673_v1 = vrot.slane %v651_v51, %v2512_v17  ;;  %v522_v2 = vrot.slane %v514_v52, %v2512_v17 }
 0x1b6   : > { %v377_v27 = vpop.permute.xlu1 %376  ;;  %v375_v28 = vpop.permute.xlu0 %374 }
 0x1b7   : > { %v922_v54 = vcombine.low %v2539_v4, %v377_v27  ;;  %v923_v57 = vcombine.high %v2539_v4, %v377_v27  ;;  %v786_v58 = vcombine.low %v2541_v5, %v375_v28  ;;  %v787_v59 = vcombine.high %v2541_v5, %v375_v28 }
 0x1b8   : > { %v529_v5 = vrot.slane %v515_v53, %v2512_v17 }
 0x1b9   : > { %v2680_v6 = vrot.slane %v922_v54, %v2512_v17  ;;  %v2692_v25 = vrot.slane %v786_v58, %v2512_v17 }
 0x1ba   : > { %v381_v30 = vpop.permute.xlu1 %380  ;;  %v379_v31 = vpop.permute.xlu0 %378 }
 0x1bb   : > { %v1194_v62 = vcombine.low %v2545_v9, %v381_v30  ;;  %v1195_v63 = vcombine.high %v2545_v9, %v381_v30  ;;  %v1058_v3 = vcombine.low %v2547_v10, %v379_v31  ;;  %v1059_v4 = vcombine.high %v2547_v10, %v379_v31 }
 0x1bc   : > { %v2695_v10 = vrot.slane %v787_v59, %v2512_v17 }
 0x1bd   : > { %v2699_v27 = vrot.slane %v1194_v62, %v2512_v17  ;;  %v2708_v31 = vrot.slane %v1058_v3, %v2512_v17 }
 0x1be   : > { %v385_v32 = vpop.permute.xlu1 %384  ;;  %v2621_v33 = vpop.permute.xlu0 %382 }
 0x1bf   : > { %v1466_v7 = vcombine.low %v2551_v14, %v385_v32  ;;  %v1467_v9 = vcombine.high %v2551_v14, %v385_v32  ;;  %v2702_v14 = vrot.slane %v1195_v63, %v2512_v17  ;;  %3769 = vst [vmem:[#allocation7_spill] sm:$0xff] %v2708_v31  ;;  %v2711_v32 = vrot.slane %v1059_v4, %v2512_v17 }
 0x1c0   : > { %v1331_v53 = vcombine.high %v2553_v15, %v2621_v33 }
 0x1c1   : > { %v2718_v51 = vrot.slane %v1466_v7, %v2512_v17  ;;  %v2721_v52 = vrot.slane %v1467_v9, %v2512_v17 }
 0x1c2   : > { %v2623_v34 = vpop.permute.xlu1 %396  ;;  %v395_v35 = vpop.permute.xlu0 %394 }
 0x1c3   : > { %v530_v60 = vcombine.low %v2607_v18, %v395_v35  ;;  %v531_v0 = vcombine.high %v2607_v18, %v395_v35  ;;  %v2689_v18 = vrot.slane %v923_v57, %v2512_v17  ;;  %v666_v28 = vcombine.low %v2605_v16, %v2623_v34 }
 0x1c4   : > { %v1330_v35 = vcombine.low %v2553_v15, %v2621_v33  ;;  %v667_v54 = vcombine.high %v2605_v16, %v2623_v34 }
 0x1c5   : > { %v538_v26 = vrot.slane %v530_v60, %v2512_v17  ;;  %v545_v30 = vrot.slane %v531_v0, %v2512_v17  ;;  %v674_v0 = vrot.slane %v666_v28, %v2512_v17 }
 0x1c6   : > { %v2625_v36 = vpop.permute.xlu1 %400  ;;  %v2627_v37 = vpop.permute.xlu0 %398  ;;  %v2741_v34 = vrot.slane %v1330_v35, %v2512_v17 }
 0x1c7   : > { %v938_v50 = vcombine.low %v2609_v19, %v2625_v36  ;;  %v939_v59 = vcombine.high %v2609_v19, %v2625_v36  ;;  %v802_v60 = vcombine.low %v2611_v20, %v2627_v37  ;;  %v803_v62 = vcombine.high %v2611_v20, %v2627_v37 }
 0x1c8   : > { %v578_v63 = vcombine.low %v522_v2, %v538_v26  ;;  %v594_v16 = vcombine.low %v529_v5, %v545_v30  ;;  %v579_v33 = vcombine.high %v522_v2, %v538_v26  ;;  %v595_v36 = vcombine.high %v529_v5, %v545_v30 }
 0x1c9   : > { %v2744_v3 = vrot.slane %v938_v50, %v2512_v17  ;;  %v2749_v20 = vrot.slane %v1331_v53, %v2512_v17  ;;  %v681_v37 = vrot.slane %v667_v54, %v2512_v17  ;;  %v2761_v26 = vrot.slane %v939_v59, %v2512_v17 }
 0x1ca   : > { %v2629_v38 = vpop.permute.xlu1 %404  ;;  %v2631_v39 = vpop.permute.xlu0 %402  ;;  %v2768_v5 = vrot.slane %v578_v63, %v2517_v29  ;;  %v714_v30 = vcombine.low %v2667_v61, %v674_v0  ;;  %v2788_v54 = vrot.slane %v595_v36, %v2517_v29  ;;  %v715_v36 = vcombine.high %v2667_v61, %v674_v0 }
 0x1cb   : > { %v1210_v15 = vcombine.low %v2613_v21, %v2629_v38  ;;  %v1211_v19 = vcombine.high %v2613_v21, %v2629_v38  ;;  %v1074_v4 = vcombine.low %v2615_v22, %v2631_v39  ;;  %v1075_v2 = vcombine.high %v2615_v22, %v2631_v39 }
 0x1cc   : > { %v810_v21 = vrot.slane %v802_v60, %v2512_v17  ;;  %v2765_v38 = vrot.slane %v803_v62, %v2512_v17  ;;  %v2774_v22 = vrot.slane %v594_v16, %v2517_v29  ;;  %v2777_v39 = vrot.slane %v579_v33, %v2517_v29 }
 0x1cd   : > { %v2771_v28 = vrot.slane %v1210_v15, %v2512_v17  ;;  %v2783_v50 = vrot.slane %v1211_v19, %v2512_v17  ;;  %v2791_v59 = vrot.slane %v1074_v4, %v2512_v17  ;;  %v2794_v60 = vrot.slane %v1075_v2, %v2512_v17 }
 0x1ce   : > { %v2633_v40 = vpop.permute.xlu1 %408  ;;  %v2635_v41 = vpop.permute.xlu0 %406  ;;  %v730_v4 = vcombine.low %v2673_v1, %v681_v37  ;;  %v2815_v2 = vrot.slane %v714_v30, %v2517_v29  ;;  %v731_v8 = vcombine.high %v2673_v1, %v681_v37  ;;  %v851_v19 = vcombine.high %v2692_v25, %v810_v21 }
 0x1cf   : > { %v1482_v53 = vcombine.low %v2617_v23, %v2633_v40  ;;  %3770 = vst [vmem:[#allocation8_spill] sm:$0xff] %v2791_v59  ;;  %v1483_v62 = vcombine.high %v2617_v23, %v2633_v40  ;;  %v1346_v63 = vcombine.low %v2619_v24, %v2635_v41  ;;  %v1258_v23 = vcombine.low %v2699_v27, %v2771_v28 }
 0x1d0   : > { %v1347_v40 = vcombine.high %v2619_v24, %v2635_v41  ;;  %v1259_v33 = vcombine.high %v2699_v27, %v2771_v28  ;;  %v1123_v35 = vcombine.high %v2708_v31, %v2791_v59  ;;  %v2845_v61 = vrot.slane %v730_v4, %v2517_v29 }
 0x1d1   : > { %v1490_v0 = vrot.slane %v1482_v53, %v2512_v17  ;;  %v2830_v41 = vrot.slane %v1483_v62, %v2512_v17  ;;  %v1354_v1 = vrot.slane %v1346_v63, %v2512_v17  ;;  %v2842_v53 = vrot.slane %v715_v36, %v2517_v29 }
 0x1d2   : > { %v2637_v42 = vpop.permute.xlu1 %420  ;;  %v2639_v43 = vpop.permute.xlu0 %418  ;;  %3772 = vst [vmem:[#allocation10_spill] sm:$0xff] %v2845_v61  ;;  %v2848_v62 = vrot.slane %v1347_v40, %v2512_v17  ;;  %v2851_v63 = vrot.slane %v731_v8, %v2517_v29  ;;  %v850_v24 = vcombine.low %v2692_v25, %v810_v21  ;;  %v866_v12 = vcombine.low %v2695_v10, %v2765_v38 }
 0x1d3   : > { %3771 = vst [vmem:[#allocation9_spill] sm:$0xff] %v2842_v53  ;;  %v1530_v28 = vcombine.low %v2718_v51, %v1490_v0  ;;  %v867_v36 = vcombine.high %v2695_v10, %v2765_v38  ;;  %v986_v4 = vcombine.low %v2680_v6, %v2744_v3  ;;  %v1531_v40 = vcombine.high %v2718_v51, %v1490_v0 }
 0x1d4   : > { %3773 = vst [vmem:[#allocation11_spill] sm:$0xff] %v2851_v63  ;;  %v1394_v25 = vcombine.low %v2741_v34, %v1354_v1  ;;  %v1395_v53 = vcombine.high %v2741_v34, %v1354_v1  ;;  %v2878_v63 = vrot.slane %v850_v24, %v2517_v29  ;;  %v2881_v8 = vrot.slane %v851_v19, %v2517_v29 }
 0x1d5   : > { %v2886_v1 = vrot.slane %v866_v12, %v2517_v29  ;;  %v2889_v38 = vrot.slane %v867_v36, %v2517_v29  ;;  %v2892_v51 = vrot.slane %v986_v4, %v2517_v29  ;;  %v2895_v24 = vrot.slane %v1258_v23, %v2517_v29 }
 0x1d6   : > { %v2641_v44 = vpop.permute.xlu1 %424  ;;  %v2643_v45 = vpop.permute.xlu0 %422  ;;  %v2898_v19 = vrot.slane %v1394_v25, %v2517_v29  ;;  %v2901_v31 = vrot.slane %v1530_v28, %v2517_v29  ;;  %v3777_v12 = vcombine.high %v2680_v6, %v2744_v3  ;;  %v2915_v23 = vrot.slane %v1123_v35, %v2517_v29 }
 0x1d7   : > { %3768 = vst [vmem:[#allocation6_spill] sm:$0xff] %v2641_v44  ;;  %3774 = vst [vmem:[#allocation12_spill] sm:$0xff] %v2889_v38  ;;  %v2912_v38 = vrot.slane %v1259_v33, %v2517_v29  ;;  %v2924_v3 = vrot.slane %v1531_v40, %v2517_v29  ;;  %v2932_v35 = vrot.slane %v1395_v53, %v2517_v29 }
 0x1d8   : > { %3775 = vst [vmem:[#allocation13_spill] sm:$0xff] %v2892_v51  ;;  %3776 = vst [vmem:[#allocation14_spill] sm:$0xff] %v2898_v19  ;;  %v2907_v36 = vrot.slane %v3777_v12, %v2517_v29 }
 0x1d9   : > { %3779 = vst [vmem:[#allocation16_spill] sm:$0xff] %v2912_v38  ;;  %3780 = vst [vmem:[#allocation17_spill] sm:$0xff] %v2915_v23 }
 0x1da   : > { %v2645_v46 = vpop.permute.xlu1 %428  ;;  %v2647_v47 = vpop.permute.xlu0 %426  ;;  %3778 = vst [vmem:[#allocation15_spill] sm:$0xff] %v2907_v36  ;;  %3781 = vst [vmem:[#allocation18_spill] sm:$0xff] %v2924_v3 }
 0x1db   : > { %3782 = vst [vmem:[#allocation19_spill] sm:$0xff] %v2932_v35 }
 0x1de   : > { %v2649_v48 = vpop.permute.xlu1 %432  ;;  %v2651_v49 = vpop.permute.xlu0 %430 }
 0x1e2   : > { %v2658_v55 = vpop.permute.xlu1 %444  ;;  %v2660_v56 = vpop.permute.xlu0 %442 }
 0x1e6   : > { %v2684_v11 = vpop.permute.xlu1 %448  ;;  %v2686_v13 = vpop.permute.xlu0 %446 }
 0x1ea   : > { %v2727_v57 = vpop.permute.xlu1 %452  ;;  %v2729_v58 = vpop.permute.xlu0 %450 }
 0x1ee   : > { %v2756_v7 = vpop.permute.xlu1 %456  ;;  %v2758_v9 = vpop.permute.xlu0 %454 }
 0x1f2   : > { %v2800_v15 = vpop.permute.xlu1 %468  ;;  %v2802_v16 = vpop.permute.xlu0 %466 }
 0x1f3   : > { %v682_v34 = vcombine.low %v2637_v42, %v2800_v15  ;;  %v683_v28 = vcombine.high %v2637_v42, %v2800_v15  ;;  %v546_v25 = vcombine.low %v2639_v43, %v2802_v16  ;;  %v547_v6 = vcombine.high %v2639_v43, %v2802_v16 }
 0x1f4   : > { %v3783_v42 = vcombine.low %v2689_v18, %v2761_v26 }
 0x1f5   : > { %v2927_v12 = vrot.slane %v682_v34, %v2512_v17 }
 0x1f6   : > { %v2833_v27 = vpop.permute.xlu1 %472  ;;  %v2835_v37 = vpop.permute.xlu0 %470  ;;  %v2938_v15 = vrot.slane %v3783_v42, %v2517_v29 }
 0x1f7   : > { %v955_v30 = vcombine.high %v2641_v44, %v2833_v27  ;;  %v818_v33 = vcombine.low %v2643_v45, %v2835_v37  ;;  %v819_v43 = vcombine.high %v2643_v45, %v2835_v37  ;;  %v554_v45 = vrot.slane %v546_v25, %v2512_v17 }
 0x1f8   : > { %3784 = vst [vmem:[#allocation20_spill] sm:$0xff] %v2938_v15  ;;  %v2950_v15 = vrot.slane %v683_v28, %v2512_v17 }
 0x1fa   : > { %v477_v21 = vpop.permute.xlu1 %476  ;;  %v475_v61 = vpop.permute.xlu0 %474 }
 0x1fb   : > { %v1227_v44 = vcombine.high %v2645_v46, %v477_v21  ;;  %v1091_v10 = vcombine.high %v2647_v47, %v475_v61  ;;  %v1226_v16 = vcombine.low %v2645_v46, %v477_v21  ;;  %v1090_v40 = vcombine.low %v2647_v47, %v475_v61 }
 0x1fc   : > { %v561_v46 = vrot.slane %v547_v6, %v2512_v17 }
 0x1fd   : > { %v2967_v37 = vrot.slane %v1226_v16, %v2512_v17  ;;  %v2970_v21 = vrot.slane %v1227_v44, %v2512_v17 }
 0x1fe   : > { %v481_v59 = vpop.permute.xlu1 %480  ;;  %v479_v0 = vpop.permute.xlu0 %478 }
 0x1ff   : > { %v1499_v4 = vcombine.high %v2649_v48, %v481_v59  ;;  %v1363_v51 = vcombine.high %v2651_v49, %v479_v0  ;;  %v1498_v34 = vcombine.low %v2649_v48, %v481_v59  ;;  %v1362_v47 = vcombine.low %v2651_v49, %v479_v0 }
 0x200   : > { %v2956_v48 = vrot.slane %v955_v30, %v2512_v17  ;;  %v2959_v59 = vrot.slane %v818_v33, %v2512_v17 }
 0x201   : > { %v2984_v28 = vrot.slane %v1498_v34, %v2512_v17  ;;  %v2990_v44 = vrot.slane %v1499_v4, %v2512_v17  ;;  %v2993_v6 = vrot.slane %v1362_v47, %v2512_v17 }
 0x202   : > { %v493_v3 = vpop.permute.xlu1 %492  ;;  %v491_v23 = vpop.permute.xlu0 %490 }
 0x203   : > { %v698_v53 = vcombine.low %v2658_v55, %v493_v3  ;;  %v699_v35 = vcombine.high %v2658_v55, %v493_v3  ;;  %v562_v38 = vcombine.low %v2660_v56, %v491_v23  ;;  %v563_v42 = vcombine.high %v2660_v56, %v491_v23  ;;  %3785 = vst [vmem:[#allocation21_spill] sm:$0xff] %v2990_v44 }
 0x204   : > { %v2964_v56 = vrot.slane %v819_v43, %v2512_v17  ;;  %v2978_v23 = vrot.slane %v1090_v40, %v2512_v17  ;;  %v2996_v3 = vrot.slane %v1363_v51, %v2512_v17 }
 0x205   : > { %v570_v55 = vrot.slane %v562_v38, %v2512_v17  ;;  %v577_v61 = vrot.slane %v563_v42, %v2512_v17  ;;  %v2973_v49 = vrot.slane %v698_v53, %v2512_v17  ;;  %v2981_v38 = vrot.slane %v1091_v10, %v2512_v17 }
 0x206   : > { %v2975_v30 = vpop.permute.xlu1 %496  ;;  %v495_v0 = vpop.permute.xlu0 %494  ;;  %v2987_v25 = vrot.slane %v699_v35, %v2512_v17 }
 0x207   : > { %v610_v33 = vcombine.low %v554_v45, %v570_v55  ;;  %v611_v43 = vcombine.high %v554_v45, %v570_v55  ;;  %v626_v10 = vcombine.low %v561_v46, %v577_v61  ;;  %v971_v16 = vcombine.high %v2684_v11, %v2975_v30 }
 0x208   : > { %v835_v40 = vcombine.high %v2686_v13, %v495_v0  ;;  %v746_v35 = vcombine.low %v2927_v12, %v2973_v49  ;;  %v627_v34 = vcombine.high %v561_v46, %v577_v61  ;;  %v834_v53 = vcombine.low %v2686_v13, %v495_v0 }
 0x209   : > { %v3009_v47 = vrot.slane %v971_v16, %v2512_v17  ;;  %v618_v36 = vrot.slane %v610_v33, %v2517_v29  ;;  %v3024_v16 = vrot.slane %v626_v10, %v2517_v29 }
 0x20a   : > { %v501_v51 = vpop.permute.xlu1 %500  ;;  %v499_v42 = vpop.permute.xlu0 %498  ;;  %v3012_v55 = vrot.slane %v835_v40, %v2512_v17  ;;  %v3027_v40 = vrot.slane %v611_v43, %v2517_v29  ;;  %v3030_v33 = vrot.slane %v834_v53, %v2512_v17 }
 0x20b   : > { %v1242_v19 = vcombine.low %v2727_v57, %v501_v51  ;;  %v1243_v4 = vcombine.high %v2727_v57, %v501_v51  ;;  %v1106_v46 = vcombine.low %v2729_v58, %v499_v42  ;;  %v1107_v13 = vcombine.high %v2729_v58, %v499_v42 }
 0x20c   : > { %v3037_v42 = vrot.slane %v627_v34, %v2517_v29  ;;  %v643_v57 = vcombine.high %v2768_v5, %v618_v36  ;;  %v642_v34 = vcombine.low %v2768_v5, %v618_v36  ;;  %v646_v5 = vcombine.low %v2774_v22, %v3024_v16 }
 0x20d   : > { %v3040_v0 = vrot.slane %v1242_v19, %v2512_v17  ;;  %v3043_v10 = vrot.slane %v1243_v4, %v2512_v17  ;;  %v3046_v43 = vrot.slane %v1106_v46, %v2512_v17  ;;  %v3049_v53 = vrot.slane %v1107_v13, %v2512_v17 }
 0x20e   : > { %v505_v51 = vpop.permute.xlu1 %504  ;;  %v503_v45 = vpop.permute.xlu0 %502  ;;  %v1606_v13 = vsel %vm1602_vm0, %v643_v57, -inf  ;;  %v1603_v19 = vsel %vm1602_vm0, %v642_v34, -inf  ;;  %v882_v36 = vcombine.low %v2959_v59, %v3030_v33  ;;  %v1615_v57 = vsel %vm1602_vm0, %v646_v5, -inf }
 0x20f   : > { %v1514_v61 = vcombine.low %v2756_v7, %v505_v51  ;;  %v1515_v58 = vcombine.high %v2756_v7, %v505_v51  ;;  %1607 = vmax.xlane.f32.xlu1 %v1606_v13  ;;  %1604 = vmax.xlane.f32.xlu0 %v1603_v19  ;;  %v1378_v51 = vcombine.low %v2758_v9, %v503_v45 }
 0x210   : > { %v1379_v7 = vcombine.high %v2758_v9, %v503_v45  ;;  %v763_v19 = vcombine.high %v2950_v15, %v2987_v25  ;;  %v644_v13 = vcombine.low %v2777_v39, %v3027_v40  ;;  %v648_v34 = vcombine.low %v2788_v54, %v3037_v42 }
 0x211   : > { %v3072_v4 = vrot.slane %v1514_v61, %v2512_v17  ;;  %v3075_v46 = vrot.slane %v1515_v58, %v2512_v17  ;;  %v3094_v9 = vrot.slane %v1378_v51, %v2512_v17  ;;  %v754_v58 = vrot.slane %v746_v35, %v2517_v29 }
 0x212   : > { %v3097_v45 = vrot.slane %v1379_v7, %v2512_v17  ;;  %v1609_v5 = vsel %vm1602_vm0, %v644_v13, -inf  ;;  %v645_v44 = vcombine.high %v2777_v39, %v3027_v40  ;;  %v3787_v35 = vcombine.low %v2702_v14, %v2783_v50 }
 0x213   : > { %3786 = vst [vmem:[#allocation22_spill] sm:$0xff] %v3075_v46  ;;  %1616 = vmax.xlane.f32.xlu1 %v1615_v57  ;;  %v3788_v7 = vcombine.low %v2711_v32, %v2794_v60  ;;  %v970_v57 = vcombine.low %v2684_v11, %v2975_v30  ;;  %1610 = vmax.xlane.f32.xlu0 %v1609_v5 }
 0x214   : > { %v3122_v51 = vrot.slane %v3787_v35, %v2517_v29  ;;  %v778_v13 = vcombine.low %v2815_v2, %v754_v58  ;;  %v3790_v39 = vcombine.low %v2721_v52, %v2830_v41  ;;  %v3792_v35 = vcombine.low %v2749_v20, %v2848_v62 }
 0x215   : > { %v3128_v61 = vrot.slane %v3788_v7, %v2517_v29  ;;  %v1621_v7 = vsel %vm1602_vm0, %v648_v34, -inf  ;;  %v3794_v11 = vcombine.high %v2927_v12, %v2973_v49  ;;  %v3795_v5 = vcombine.low %v2950_v15, %v2987_v25 }
 0x216   : > { %v3137_v40 = vrot.slane %v3790_v39, %v2517_v29  ;;  %v3143_v46 = vrot.slane %v3792_v35, %v2517_v29  ;;  %v3796_v39 = vcombine.high %v2689_v18, %v2761_v26  ;;  %v3797_v35 = vld [vmem:[#allocation6_spill] sm:$0xff]  ;;  %v777_v34 = vrot.slane %v763_v19, %v2517_v29 }
 0x217   : > { %3789 = vst [vmem:[#allocation23_spill] sm:$0xff] %v3128_v61  ;;  %v761_v30 = vrot.slane %v3794_v11, %v2517_v29  ;;  %v770_v61 = vrot.slane %v3795_v5, %v2517_v29  ;;  %1622 = vmax.xlane.f32.xlu1 %v1621_v7  ;;  %v890_v12 = vrot.slane %v882_v36, %v2517_v29  ;;  %v1612_v18 = vsel %vm1602_vm0, %v645_v44, -inf }
 0x218   : > { %3791 = vst [vmem:[#allocation24_spill] sm:$0xff] %v3137_v40  ;;  %3793 = vst [vmem:[#allocation25_spill] sm:$0xff] %v3143_v46  ;;  %v3158_v40 = vrot.slane %v3796_v39, %v2517_v29  ;;  %v954_v46 = vcombine.low %v3797_v35, %v2833_v27  ;;  %v3798_v49 = vcombine.high %v2702_v14, %v2783_v50  ;;  %1613 = vmax.xlane.f32.xlu0 %v1612_v18 }
 0x219   : > { %v883_v25 = vcombine.high %v2959_v59, %v3030_v33  ;;  %v647_v26 = vcombine.high %v2774_v22, %v3024_v16  ;;  %v3799_v27 = vcombine.high %v2711_v32, %v2794_v60  ;;  %v978_v36 = vrot.slane %v970_v57, %v2512_v17  ;;  %v3801_v22 = vld [vmem:[#allocation9_spill] sm:$0xff]  ;;  %v3802_v33 = vld [vmem:[#allocation10_spill] sm:$0xff] }
 0x21a   : > { %v3168_v15 = vrot.slane %v3798_v49, %v2517_v29  ;;  %v1627_v14 = vsel %vm1602_vm0, %v778_v13, -inf  ;;  %v649_v50 = vcombine.high %v2788_v54, %v3037_v42  ;;  %v3800_v59 = vcombine.high %v2721_v52, %v2830_v41  ;;  %v3803_v13 = vld [vmem:[#allocation11_spill] sm:$0xff] }
 0x21b   : > { %v3179_v19 = vrot.slane %v3799_v27, %v2517_v29  ;;  %v780_v16 = vcombine.low %v3801_v22, %v761_v30  ;;  %v782_v32 = vcombine.low %v3802_v33, %v770_v61  ;;  %v779_v60 = vcombine.high %v2815_v2, %v754_v58  ;;  %1628 = vmax.xlane.f32.xlu1 %v1627_v14 }
 0x21c   : > { %v3189_v44 = vrot.slane %v3800_v59, %v2517_v29  ;;  %v781_v57 = vcombine.high %v3801_v22, %v761_v30  ;;  %v962_v7 = vrot.slane %v954_v46, %v2512_v17  ;;  %v784_v11 = vcombine.low %v3803_v13, %v777_v34 }
 0x21d   : > { %v783_v54 = vcombine.high %v3802_v33, %v770_v61  ;;  %v914_v42 = vcombine.low %v2878_v63, %v890_v12  ;;  %v1618_v52 = vsel %vm1602_vm0, %v647_v26, -inf  ;;  %v785_v41 = vcombine.high %v3803_v13, %v777_v34 }
 0x21e   : > { %v3202_v5 = vrot.slane %v883_v25, %v2517_v29  ;;  %v3804_v2 = vcombine.high %v2749_v20, %v2848_v62  ;;  %v1018_v17 = vcombine.low %v962_v7, %v978_v36  ;;  %v1019_v46 = vcombine.high %v962_v7, %v978_v36  ;;  %1619 = vmax.xlane.f32.xlu0 %v1618_v52  ;;  %v3811_v52 = vld [vmem:[#allocation14_spill] sm:$0xff] }
 0x21f   : > { %v1624_v61 = vsel %vm1602_vm0, %v649_v50, -inf  ;;  %v3805_v30 = vcombine.low %v2964_v56, %v3012_v55  ;;  %v1633_v35 = vsel %vm1602_vm0, %v780_v16, -inf  ;;  %v1639_v34 = vsel %vm1602_vm0, %v782_v32, -inf }
 0x220   : > { %v3208_v58 = vrot.slane %v3804_v2, %v2517_v29  ;;  %v1630_v49 = vsel %vm1602_vm0, %v779_v60, -inf  ;;  %v1636_v20 = vsel %vm1602_vm0, %v781_v57, -inf  ;;  %1634 = vmax.xlane.f32.xlu1 %v1633_v35  ;;  %v1645_v62 = vsel %vm1602_vm0, %v784_v11, -inf  ;;  %v3820_v60 = vld [vmem:[#allocation17_spill] sm:$0xff] }
 0x221   : > { %v3215_v39 = vrot.slane %v3805_v30, %v2517_v29  ;;  %v1642_v25 = vsel %vm1602_vm0, %v783_v54, -inf  ;;  %v1651_v18 = vsel %vm1602_vm0, %v914_v42, -inf  ;;  %v915_v26 = vcombine.high %v2878_v63, %v890_v12  ;;  %v3818_v42 = vld [vmem:[#allocation16_spill] sm:$0xff] }
 0x222   : > { %v3226_v27 = vsel %vm1602_vm0, %v785_v41, -inf  ;;  %v916_v36 = vcombine.low %v2881_v8, %v3202_v5  ;;  %v3806_v14 = vcombine.high %v2964_v56, %v3012_v55  ;;  %v3807_v59 = vcombine.low %v2967_v37, %v3040_v0  ;;  %1625 = vmax.xlane.f32.xlu0 %v1624_v61  ;;  %v3813_v61 = vld [vmem:[#allocation15_spill] sm:$0xff] }
 0x223   : > { %v918_v63 = vcombine.low %v2886_v1, %v3215_v39  ;;  %v3245_v12 = vrot.slane %v1018_v17, %v2517_v29  ;;  %v3808_v16 = vcombine.low %v2993_v6, %v3094_v9  ;;  %v3809_v55 = vcombine.low %v2984_v28, %v3072_v4  ;;  %v3812_v17 = vld [vmem:[#allocation12_spill] sm:$0xff] }
 0x224   : > { %v3234_v50 = vrot.slane %v3806_v14, %v2517_v29  ;;  %v3240_v22 = vrot.slane %v3807_v59, %v2517_v29  ;;  %v1033_v7 = vrot.slane %v1019_v46, %v2517_v29  ;;  %1640 = vmax.xlane.f32.xlu1 %v1639_v34  ;;  %v3267_v13 = vsel %vm1602_vm0, %v915_v26, -inf  ;;  %v3814_v26 = vld [vmem:[#allocation13_spill] sm:$0xff]  ;;  %v3835_v46 = vld [vmem:[#allocation23_spill] sm:$0xff] }
 0x225   : > { %v3251_v56 = vrot.slane %v3808_v16, %v2517_v29  ;;  %v3257_v33 = vrot.slane %v3809_v55, %v2517_v29  ;;  %v3810_v11 = vcombine.low %v2978_v23, %v3046_v43  ;;  %v1657_v2 = vsel %vm1602_vm0, %v916_v36, -inf }
 0x226   : > { %v1052_v30 = vcombine.low %v3813_v61, %v1033_v7  ;;  %1631 = vmax.xlane.f32.xlu0 %v1630_v49  ;;  %v1663_v34 = vsel %vm1602_vm0, %v918_v63, -inf  ;;  %v3815_v36 = vcombine.high %v2967_v37, %v3040_v0  ;;  %v3816_v49 = vcombine.high %v2978_v23, %v3046_v43  ;;  %v3821_v43 = vld [vmem:[#allocation18_spill] sm:$0xff] }
 0x227   : > { %v3273_v54 = vrot.slane %v3810_v11, %v2517_v29  ;;  %v1459_v41 = vcombine.high %v3811_v52, %v3251_v56  ;;  %v1595_v35 = vcombine.high %v2901_v31, %v3257_v33  ;;  %v3819_v0 = vcombine.high %v2993_v6, %v3094_v9  ;;  %v3823_v6 = vld [vmem:[#allocation19_spill] sm:$0xff] }
 0x228   : > { %v1305_v16 = vrot.slane %v3815_v36, %v2517_v29  ;;  %v3296_v55 = vsel %vm1602_vm0, %v1052_v30, -inf  ;;  %v1169_v63 = vrot.slane %v3816_v49, %v2517_v29  ;;  %1646 = vmax.xlane.f32.xlu1 %v1645_v62 }
 0x229   : > { %v3289_v59 = vsel %vm1602_vm0, %v1459_v41, -inf  ;;  %v3299_v11 = vsel %vm1602_vm0, %v1595_v35, -inf  ;;  %v3817_v41 = vcombine.high %v2984_v28, %v3072_v4  ;;  %v1441_v30 = vrot.slane %v3819_v0, %v2517_v29 }
 0x22a   : > { %v1324_v37 = vcombine.low %v3818_v42, %v1305_v16  ;;  %v1053_v35 = vcombine.high %v3813_v61, %v1033_v7  ;;  %v1325_v36 = vcombine.high %v3818_v42, %v1305_v16  ;;  %v1188_v23 = vcombine.low %v3820_v60, %v1169_v63  ;;  %1637 = vmax.xlane.f32.xlu0 %v1636_v20 }
 0x22b   : > { %v1577_v57 = vrot.slane %v3817_v41, %v2517_v29  ;;  %v1189_v14 = vcombine.high %v3820_v60, %v1169_v63  ;;  %v3822_v28 = vcombine.low %v2956_v48, %v3009_v47  ;;  %v1460_v9 = vcombine.low %v3823_v6, %v1441_v30 }
 0x22c   : > { %v3324_v62 = vsel %vm1602_vm0, %v1324_v37, -inf  ;;  %v3328_v7 = vsel %vm1602_vm0, %v1053_v35, -inf  ;;  %v1461_v42 = vcombine.high %v3823_v6, %v1441_v30  ;;  %v3332_v61 = vsel %vm1602_vm0, %v1188_v23, -inf  ;;  %1652 = vmax.xlane.f32.xlu1 %v1651_v18  ;;  %v3827_v37 = vld [vmem:[#allocation20_spill] sm:$0xff]  ;;  %v3830_v23 = vld [vmem:[#allocation21_spill] sm:$0xff] }
 0x22d   : > { %v1596_v49 = vcombine.low %v3821_v43, %v1577_v57  ;;  %v1042_v4 = vrot.slane %v3822_v28, %v2517_v29  ;;  %3824 = vst [vmem:[#allocation6_spill] sm:$0xff] %v3328_v7  ;;  %v3338_v16 = vsel %vm1602_vm0, %v1189_v14, -inf  ;;  %v3341_v20 = vsel %vm1602_vm0, %v1325_v36, -inf  ;;  %v3836_v7 = vld [vmem:[#allocation24_spill] sm:$0xff] }
 0x22e   : > { %3825 = vst [vmem:[#allocation9_spill] sm:$0xff] %v3341_v20  ;;  %v3344_v63 = vsel %vm1602_vm0, %v1460_v9, -inf  ;;  %v3347_v41 = vsel %vm1602_vm0, %v1461_v42, -inf  ;;  %v1597_v30 = vcombine.high %v3821_v43, %v1577_v57  ;;  %v3828_v35 = vcombine.low %v2970_v21, %v3043_v10  ;;  %1643 = vmax.xlane.f32.xlu0 %v1642_v25  ;;  %v3837_v25 = vld [vmem:[#allocation25_spill] sm:$0xff] }
 0x22f   : > { %v3335_v60 = vsel %vm1602_vm0, %v1596_v49, -inf  ;;  %3826 = vst [vmem:[#allocation10_spill] sm:$0xff] %v3347_v41  ;;  %v1054_v0 = vcombine.low %v3827_v37, %v1042_v4  ;;  %v3829_v36 = vcombine.low %v2981_v38, %v3049_v53  ;;  %v3831_v49 = vld [vmem:[#allocation22_spill] sm:$0xff]  ;;  %v3833_v9 = vcombine.low %v2996_v3, %v3097_v45 }
 0x230   : > { %v1314_v14 = vrot.slane %v3828_v35, %v2517_v29  ;;  %v3832_v28 = vcombine.low %v3830_v23, %v3831_v49  ;;  %v3371_v42 = vsel %vm1602_vm0, %v1597_v30, -inf  ;;  %v1055_v35 = vcombine.high %v3827_v37, %v1042_v4  ;;  %1658 = vmax.xlane.f32.xlu1 %v1657_v2 }
 0x231   : > { %v1178_v18 = vrot.slane %v3829_v36, %v2517_v29  ;;  %v1450_v57 = vrot.slane %v3833_v9, %v2517_v29  ;;  %v3368_v43 = vsel %vm1602_vm0, %v1054_v0, -inf  ;;  %v3834_v36 = vcombine.high %v2956_v48, %v3009_v47 }
 0x232   : > { %v1586_v6 = vrot.slane %v3832_v28, %v2517_v29  ;;  %v1326_v28 = vcombine.low %v3122_v51, %v1314_v14  ;;  %v3384_v30 = vsel %vm1602_vm0, %v1055_v35, -inf  ;;  %v1327_v37 = vcombine.high %v3122_v51, %v1314_v14  ;;  %1649 = vmax.xlane.f32.xlu0 %v3226_v27 }
 0x233   : > { %v1049_v32 = vrot.slane %v3834_v36, %v2517_v29  ;;  %v1190_v20 = vcombine.low %v3835_v46, %v1178_v18  ;;  %v1462_v41 = vcombine.low %v3837_v25, %v1450_v57  ;;  %v1191_v0 = vcombine.high %v3835_v46, %v1178_v18 }
 0x234   : > { %v1598_v9 = vcombine.low %v3836_v7, %v1586_v6  ;;  %v1463_v4 = vcombine.high %v3837_v25, %v1450_v57  ;;  %v3389_v48 = vsel %vm1602_vm0, %v1326_v28, -inf  ;;  %v3408_v51 = vsel %vm1602_vm0, %v1327_v37, -inf  ;;  %1664 = vmax.xlane.f32.xlu1 %v1663_v34 }
 0x235   : > { %v3392_v47 = vsel %vm1602_vm0, %v1190_v20, -inf  ;;  %v3398_v2 = vsel %vm1602_vm0, %v1462_v41, -inf  ;;  %v3402_v46 = vsel %vm1602_vm0, %v1191_v0, -inf  ;;  %v1056_v20 = vcombine.low %v3158_v40, %v1049_v32 }
 0x236   : > { %v3395_v36 = vsel %vm1602_vm0, %v1598_v9, -inf  ;;  %v3405_v18 = vsel %vm1602_vm0, %v1463_v4, -inf  ;;  %v1599_v14 = vcombine.high %v3836_v7, %v1586_v6  ;;  %v3838_v41 = vcombine.high %v2970_v21, %v3043_v10  ;;  %1655 = vmax.xlane.f32.xlu0 %v3267_v13 }
 0x237   : > { %v3839_v27 = vcombine.high %v2981_v38, %v3049_v53  ;;  %v3840_v28 = vcombine.high %v3830_v23, %v3831_v49  ;;  %v3841_v25 = vcombine.low %v3812_v17, %v3234_v50  ;;  %v3429_v6 = vsel %vm1602_vm0, %v1056_v20, -inf }
 0x238   : > { %v1321_v57 = vrot.slane %v3838_v41, %v2517_v29  ;;  %v3842_v21 = vcombine.high %v2996_v3, %v3097_v45  ;;  %v1057_v10 = vcombine.high %v3158_v40, %v1049_v32  ;;  %v3437_v53 = vsel %vm1602_vm0, %v1599_v14, -inf }
 0x239   : > { %v1185_v35 = vrot.slane %v3839_v27, %v2517_v29  ;;  %v1593_v9 = vrot.slane %v3840_v28, %v2517_v29  ;;  %v1669_v7 = vsel %vm1602_vm0, %v3841_v25, -inf  ;;  %v3844_v28 = vld [vmem:[#allocation7_spill] sm:$0xff] }
 0x23a   : > { %v1457_v38 = vrot.slane %v3842_v21, %v2517_v29  ;;  %v1328_v34 = vcombine.low %v3168_v15, %v1321_v57  ;;  %v3446_v3 = vsel %vm1602_vm0, %v1057_v10, -inf  ;;  %v1329_v20 = vcombine.high %v3168_v15, %v1321_v57  ;;  %1670 = vmax.xlane.f32.xlu1 %v1669_v7  ;;  %v3845_v15 = vld [vmem:[#allocation8_spill] sm:$0xff] }
 0x23b   : > { %v1192_v23 = vcombine.low %v3179_v19, %v1185_v35  ;;  %v1600_v49 = vcombine.low %v3189_v44, %v1593_v9  ;;  %v1193_v4 = vcombine.high %v3179_v19, %v1185_v35  ;;  %v1601_v41 = vcombine.high %v3189_v44, %v1593_v9 }
 0x23c   : > { %v1464_v0 = vcombine.low %v3208_v58, %v1457_v38  ;;  %v1465_v45 = vcombine.high %v3208_v58, %v1457_v38  ;;  %v1741_v40 = vsel %vm1602_vm0, %v1328_v34, -inf  ;;  %v3843_v58 = vcombine.high %v2881_v8, %v3202_v5 }
 0x23d   : > { %v3451_v32 = vsel %vm1602_vm0, %v1192_v23, -inf  ;;  %v1789_v37 = vsel %vm1602_vm0, %v1600_v49, -inf  ;;  %v1720_v14 = vsel %vm1602_vm0, %v1193_v4, -inf  ;;  %v919_v35 = vcombine.high %v2886_v1, %v3215_v39 }
 0x23e   : > { %v1765_v13 = vsel %vm1602_vm0, %v1464_v0, -inf  ;;  %v1768_v19 = vsel %vm1602_vm0, %v1465_v45, -inf  ;;  %v1660_v27 = vsel %vm1602_vm0, %v3843_v58, -inf  ;;  %v3846_v57 = vcombine.low %v3844_v28, %v3845_v15 }
 0x23f   : > { %v1744_v7 = vsel %vm1602_vm0, %v1329_v20, -inf  ;;  %1661 = vmax.xlane.f32.xlu0 %v1660_v27  ;;  %v1792_v21 = vsel %vm1602_vm0, %v1601_v41, -inf  ;;  %v3847_v44 = vcombine.low %v3814_v26, %v3245_v12  ;;  %v1666_v1 = vsel %vm1602_vm0, %v919_v35, -inf }
 0x240   : > { %v1130_v25 = vrot.slane %v3846_v57, %v2517_v29  ;;  %v921_v39 = vcombine.high %v3812_v17, %v3234_v50  ;;  %v1051_v38 = vcombine.high %v3814_v26, %v3245_v12  ;;  %v3848_v10 = vcombine.low %v2895_v24, %v3240_v22 }
 0x241   : > { %v1675_v8 = vsel %vm1602_vm0, %v3847_v44, -inf  ;;  %v1458_v23 = vcombine.low %v3811_v52, %v3251_v56  ;;  %v3849_v26 = vcombine.low %v2901_v31, %v3257_v33  ;;  %v3850_v56 = vcombine.high %v2895_v24, %v3240_v22  ;;  %v3851_v31 = vld [vmem:[#allocation10_spill] sm:$0xff]  ;;  %v3853_v22 = vld [vmem:[#allocation9_spill] sm:$0xff] }
 0x242   : > { %v1186_v5 = vcombine.low %v1130_v25, %v3273_v54  ;;  %1676 = vmax.xlane.f32.xlu1 %v1675_v8  ;;  %v1672_v9 = vsel %vm1602_vm0, %v921_v39, -inf  ;;  %v1723_v34 = vsel %vm1602_vm0, %v3848_v10, -inf  ;;  %v1678_v50 = vsel %vm1602_vm0, %v1051_v38, -inf  ;;  %v3852_v24 = vld [vmem:[#allocation6_spill] sm:$0xff] }
 0x243   : > { %1667 = vmax.xlane.f32.xlu0 %v1666_v1  ;;  %v1187_v17 = vcombine.high %v1130_v25, %v3273_v54  ;;  %v1747_v49 = vsel %vm1602_vm0, %v1458_v23, -inf  ;;  %v1771_v0 = vsel %vm1602_vm0, %v3849_v26, -inf  ;;  %v1726_v52 = vsel %vm1602_vm0, %v3850_v56, -inf }
 0x244   : > { %v1699_v29 = vsel %vm1602_vm0, %v1186_v5, -inf  ;;  %v3854_v33 = vlaneseq }
 0x245   : > { %v1702_v12 = vsel %vm1602_vm0, %v1187_v17, -inf }
 0x246   : > { %1700 = vmax.xlane.f32.xlu1 %v1699_v29  ;;  %v1860_v54 = vand.u32 127, %v3854_v33 }
 0x247   : > { %1673 = vmax.xlane.f32.xlu0 %v1672_v9 }
 0x24a   : > { %1724 = vmax.xlane.f32.xlu1 %v1723_v34 }
 0x24b   : > { %1679 = vmax.xlane.f32.xlu0 %v1678_v50 }
 0x24e   : > { %1748 = vmax.xlane.f32.xlu1 %v1747_v49 }
 0x24f   : > { %1703 = vmax.xlane.f32.xlu0 %v1702_v12 }
 0x252   : > { %1772 = vmax.xlane.f32.xlu1 %v1771_v0 }
 0x253   : > { %1727 = vmax.xlane.f32.xlu0 %v1726_v52 }
 0x256   : > { %1682 = vmax.xlane.f32.xlu1 %v3296_v55 }
 0x257   : > { %1751 = vmax.xlane.f32.xlu0 %v3289_v59 }
 0x25a   : > { %1730 = vmax.xlane.f32.xlu1 %v3324_v62 }
 0x25b   : > { %1775 = vmax.xlane.f32.xlu0 %v3299_v11  ;;  %v3855_v11 = vld [vmem:[#allocation5_spill] sm:$0xff] }
 0x25c   : > { %v3528_v62 = vsub.s32 %v1860_v54, %v3855_v11 }
 0x25e   : > { %1778 = vmax.xlane.f32.xlu1 %v3335_v60 }
 0x25f   : > { %1706 = vmax.xlane.f32.xlu0 %v3332_v61 }
 0x262   : > { %1709 = vmax.xlane.f32.xlu1 %v3338_v16 }
 0x263   : > { %1754 = vmax.xlane.f32.xlu0 %v3344_v63 }
 0x266   : > { %1757 = vmax.xlane.f32.xlu1 %v3851_v31 }
 0x267   : > { %1685 = vmax.xlane.f32.xlu0 %v3852_v24 }
 0x26a   : > { %1688 = vmax.xlane.f32.xlu1 %v3368_v43 }
 0x26b   : > { %1733 = vmax.xlane.f32.xlu0 %v3853_v22 }
 0x26e   : > { %1736 = vmax.xlane.f32.xlu1 %v3389_v48 }
 0x26f   : > { %1781 = vmax.xlane.f32.xlu0 %v3371_v42 }
 0x272   : > { %1784 = vmax.xlane.f32.xlu1 %v3395_v36 }
 0x273   : > { %1712 = vmax.xlane.f32.xlu0 %v3392_v47 }
 0x276   : > { %1715 = vmax.xlane.f32.xlu1 %v3402_v46 }
 0x277   : > { %1760 = vmax.xlane.f32.xlu0 %v3398_v2 }
 0x27a   : > { %1763 = vmax.xlane.f32.xlu1 %v3405_v18 }
 0x27b   : > { %1691 = vmax.xlane.f32.xlu0 %v3384_v30 }
 0x27e   : > { %1694 = vmax.xlane.f32.xlu1 %v3429_v6 }
 0x27f   : > { %1739 = vmax.xlane.f32.xlu0 %v3408_v51 }
 0x282   : > { %1742 = vmax.xlane.f32.xlu1 %v1741_v40 }
 0x283   : > { %1787 = vmax.xlane.f32.xlu0 %v3437_v53 }
 0x286   : > { %1790 = vmax.xlane.f32.xlu1 %v1789_v37 }
 0x287   : > { %1718 = vmax.xlane.f32.xlu0 %v3451_v32 }
 0x28a   : > { %1721 = vmax.xlane.f32.xlu1 %v1720_v14 }
 0x28b   : > { %1766 = vmax.xlane.f32.xlu0 %v1765_v13 }
 0x28e   : > { %1769 = vmax.xlane.f32.xlu1 %v1768_v19 }
 0x28f   : > { %1697 = vmax.xlane.f32.xlu0 %v3446_v3 }
 0x293   : > { %1745 = vmax.xlane.f32.xlu0 %v1744_v7 }
 0x297   : > { %1793 = vmax.xlane.f32.xlu0 %v1792_v21 }
 0x29c   : > { %v1608_v59 = vpop.xlane.xlu1 %1607  ;;  %v1605_v55 = vpop.xlane.xlu0 %1604 }
 0x29d   : > { %v1868_v16 = vrot.slane %v1608_v59, %v3528_v62  ;;  %v1864_v63 = vrot.slane %v1605_v55, %v3528_v62 }
 0x29f   : > { %v2118_v48 = vsel %vm2117_vm1, %v1868_v16, %v1864_v63 }
 0x2a0   : > { %v1617_v61 = vpop.xlane.xlu1 %1616  ;;  %v1611_v60 = vpop.xlane.xlu0 %1610 }
 0x2a1   : > { %v1872_v43 = vrot.slane %v1611_v60, %v3528_v62  ;;  %v1880_v18 = vrot.slane %v1617_v61, %v3528_v62 }
 0x2a3   : > { %v2120_v36 = vsel %vm2119_vm2, %v1872_v43, %v2118_v48 }
 0x2a4   : > { %v1623_v42 = vpop.xlane.xlu1 %1622 }
 0x2a5   : > { %v1614_v30 = vpop.xlane.xlu0 %1613  ;;  %v1888_v45 = vrot.slane %v1623_v42, %v3528_v62 }
 0x2a6   : > { %v1876_v47 = vrot.slane %v1614_v30, %v3528_v62 }
 0x2a8   : > { %v1629_v2 = vpop.xlane.xlu1 %1628  ;;  %v2122_v46 = vsel %vm2121_vm3, %v1876_v47, %v2120_v36 }
 0x2a9   : > { %v2124_v53 = vsel %vm2123_vm4, %v1880_v18, %v2122_v46  ;;  %v1896_v19 = vrot.slane %v1629_v2, %v3528_v62 }
 0x2ab   : > { %v1620_v51 = vpop.xlane.xlu0 %1619 }
 0x2ac   : > { %v1884_v6 = vrot.slane %v1620_v51, %v3528_v62 }
 0x2ad   : > { %v1635_v4 = vpop.xlane.xlu1 %1634 }
 0x2ae   : > { %v2126_v3 = vsel %vm2125_vm5, %v1884_v6, %v2124_v53  ;;  %v1904_v35 = vrot.slane %v1635_v4, %v3528_v62 }
 0x2af   : > { %v1626_v40 = vpop.xlane.xlu0 %1625  ;;  %v2128_v37 = vsel %vm2127_vm6, %v1888_v45, %v2126_v3 }
 0x2b0   : > { %v1892_v32 = vrot.slane %v1626_v40, %v3528_v62 }
 0x2b1   : > { %v1641_v20 = vpop.xlane.xlu1 %1640 }
 0x2b2   : > { %v2130_v13 = vsel %vm2129_vm7, %v1892_v32, %v2128_v37  ;;  %v1912_v21 = vrot.slane %v1641_v20, %v3528_v62 }
 0x2b3   : > { %2189 = vst.msk [vmem:[%s3547_s30] sm:$0xff] %vm2188_vm8, %v2130_v13  ;;  %v1632_v14 = vpop.xlane.xlu0 %1631 }
 0x2b4   : > { %v1900_v41 = vrot.slane %v1632_v14, %v3528_v62 }
 0x2b5   : > { %v1647_v58 = vpop.xlane.xlu1 %1646 }
 0x2b6   : > { %v2131_v27 = vsel %vm2117_vm1, %v1900_v41, %v1896_v19  ;;  %v1920_v29 = vrot.slane %v1647_v58, %v3528_v62 }
 0x2b7   : > { %v1638_v28 = vpop.xlane.xlu0 %1637  ;;  %v2132_v57 = vsel %vm2119_vm2, %v1904_v35, %v2131_v27 }
 0x2b8   : > { %v1908_v15 = vrot.slane %v1638_v28, %v3528_v62 }
 0x2b9   : > { %v1653_v25 = vpop.xlane.xlu1 %1652 }
 0x2ba   : > { %v2133_v7 = vsel %vm2121_vm3, %v1908_v15, %v2132_v57  ;;  %v1928_v17 = vrot.slane %v1653_v25, %v3528_v62 }
 0x2bb   : > { %v1644_v44 = vpop.xlane.xlu0 %1643  ;;  %v2134_v5 = vsel %vm2123_vm4, %v1912_v21, %v2133_v7 }
 0x2bc   : > { %v1916_v8 = vrot.slane %v1644_v44, %v3528_v62 }
 0x2bd   : > { %v1659_v1 = vpop.xlane.xlu1 %1658 }
 0x2be   : > { %v2135_v39 = vsel %vm2125_vm5, %v1916_v8, %v2134_v5  ;;  %v1936_v0 = vrot.slane %v1659_v1, %v3528_v62 }
 0x2bf   : > { %v1650_v9 = vpop.xlane.xlu0 %1649  ;;  %v2136_v10 = vsel %vm2127_vm6, %v1920_v29, %v2135_v39 }
 0x2c0   : > { %v1924_v38 = vrot.slane %v1650_v9, %v3528_v62 }
 0x2c1   : > { %v1665_v34 = vpop.xlane.xlu1 %1664 }
 0x2c2   : > { %v2137_v23 = vsel %vm2129_vm7, %v1924_v38, %v2136_v10  ;;  %v1944_v33 = vrot.slane %v1665_v34, %v3528_v62 }
 0x2c3   : > { %2190 = vst.msk [vmem:[%s3547_s30 + $0x8] sm:$0xff] %vm2188_vm8, %v2137_v23  ;;  %v1656_v50 = vpop.xlane.xlu0 %1655 }
 0x2c4   : > { %v1932_v49 = vrot.slane %v1656_v50, %v3528_v62 }
 0x2c6   : > { %v2138_v26 = vsel %vm2117_vm1, %v1932_v49, %v1928_v17 }
 0x2c7   : > { %v1671_v12 = vpop.xlane.xlu1 %1670  ;;  %v2139_v31 = vsel %vm2119_vm2, %v1936_v0, %v2138_v26 }
 0x2c8   : > { %v1952_v60 = vrot.slane %v1671_v12, %v3528_v62 }
 0x2cc   : > { %v1662_v56 = vpop.xlane.xlu0 %1661 }
 0x2cd   : > { %v1940_v52 = vrot.slane %v1662_v56, %v3528_v62 }
 0x2cf   : > { %v3577_v24 = vpop.xlane.xlu1 %1676  ;;  %v2140_v22 = vsel %vm2121_vm3, %v1940_v52, %v2139_v31 }
 0x2d0   : > { %v1668_v54 = vpop.xlane.xlu0 %1667  ;;  %v2141_v55 = vsel %vm2123_vm4, %v1944_v33, %v2140_v22  ;;  %v1960_v10 = vrot.slane %v3577_v24, %v3528_v62 }
 0x2d1   : > { %v1948_v59 = vrot.slane %v1668_v54, %v3528_v62 }
 0x2d3   : > { %v1701_v11 = vpop.xlane.xlu1 %1700  ;;  %v2142_v61 = vsel %vm2125_vm5, %v1948_v59, %v2141_v55 }
 0x2d4   : > { %v1674_v16 = vpop.xlane.xlu0 %1673  ;;  %v2143_v43 = vsel %vm2127_vm6, %v1952_v60, %v2142_v61  ;;  %v1992_v5 = vrot.slane %v1701_v11, %v3528_v62 }
 0x2d5   : > { %v1956_v63 = vrot.slane %v1674_v16, %v3528_v62 }
 0x2d7   : > { %v3587_v42 = vpop.xlane.xlu1 %1724  ;;  %v2144_v30 = vsel %vm2129_vm7, %v1956_v63, %v2143_v43 }
 0x2d8   : > { %2191 = vst.msk [vmem:[%s3547_s30 + $0x10] sm:$0xff] %vm2188_vm8, %v2144_v30  ;;  %v1680_v48 = vpop.xlane.xlu0 %1679  ;;  %v2024_v34 = vrot.slane %v3587_v42, %v3528_v62 }
 0x2d9   : > { %v1964_v1 = vrot.slane %v1680_v48, %v3528_v62 }
 0x2db   : > { %v1749_v47 = vpop.xlane.xlu1 %1748  ;;  %v2145_v56 = vsel %vm2117_vm1, %v1964_v1, %v1960_v10 }
 0x2dc   : > { %v1704_v36 = vpop.xlane.xlu0 %1703  ;;  %v2056_v17 = vrot.slane %v1749_v47, %v3528_v62 }
 0x2dd   : > { %v1996_v21 = vrot.slane %v1704_v36, %v3528_v62 }
 0x2df   : > { %v3592_v2 = vpop.xlane.xlu1 %1772  ;;  %v2152_v23 = vsel %vm2117_vm1, %v1996_v21, %v1992_v5 }
 0x2e0   : > { %v1728_v46 = vpop.xlane.xlu0 %1727 }
 0x2e1   : > { %v2028_v49 = vrot.slane %v1728_v46, %v3528_v62 }
 0x2e3   : > { %v3594_v18 = vpop.xlane.xlu1 %1682  ;;  %v2159_v63 = vsel %vm2117_vm1, %v2028_v49, %v2024_v34 }
 0x2e4   : > { %v1752_v51 = vpop.xlane.xlu0 %1751  ;;  %v1968_v22 = vrot.slane %v3594_v18, %v3528_v62 }
 0x2e5   : > { %v2060_v29 = vrot.slane %v1752_v51, %v3528_v62 }
 0x2e6   : > { %v2146_v51 = vsel %vm2119_vm2, %v1968_v22, %v2145_v56 }
 0x2e7   : > { %v3596_v6 = vpop.xlane.xlu1 %1730  ;;  %v2166_v33 = vsel %vm2117_vm1, %v2060_v29, %v2056_v17  ;;  %v2088_v29 = vrot.slane %v3592_v2, %v3528_v62 }
 0x2e8   : > { %v3598_v53 = vpop.xlane.xlu0 %1775 }
 0x2eb   : > { %v3600_v4 = vpop.xlane.xlu1 %1778 }
 0x2ec   : > { %v1707_v3 = vpop.xlane.xlu0 %1706  ;;  %v2096_v1 = vrot.slane %v3600_v4, %v3528_v62 }
 0x2ed   : > { %v2000_v44 = vrot.slane %v1707_v3, %v3528_v62  ;;  %v2032_v3 = vrot.slane %v3596_v6, %v3528_v62  ;;  %v2092_v6 = vrot.slane %v3598_v53, %v3528_v62 }
 0x2ef   : > { %v1710_v45 = vpop.xlane.xlu1 %1709  ;;  %v2153_v12 = vsel %vm2119_vm2, %v2000_v44, %v2152_v23  ;;  %v2160_v53 = vsel %vm2119_vm2, %v2032_v3, %v2159_v63  ;;  %v2173_v23 = vsel %vm2117_vm1, %v2092_v6, %v2088_v29 }
 0x2f0   : > { %v1755_v40 = vpop.xlane.xlu0 %1754  ;;  %v2004_v39 = vrot.slane %v1710_v45, %v3528_v62  ;;  %v2174_v17 = vsel %vm2119_vm2, %v2096_v1, %v2173_v23 }
 0x2f1   : > { %v2064_v26 = vrot.slane %v1755_v40, %v3528_v62 }
 0x2f2   : > { %v2154_v52 = vsel %vm2121_vm3, %v2004_v39, %v2153_v12 }
 0x2f3   : > { %v1758_v32 = vpop.xlane.xlu1 %1757  ;;  %v2167_v43 = vsel %vm2119_vm2, %v2064_v26, %v2166_v33 }
 0x2f4   : > { %v1686_v37 = vpop.xlane.xlu0 %1685  ;;  %v2068_v31 = vrot.slane %v1758_v32, %v3528_v62 }
 0x2f5   : > { %v1972_v11 = vrot.slane %v1686_v37, %v3528_v62 }
 0x2f6   : > { %v2168_v47 = vsel %vm2121_vm3, %v2068_v31, %v2167_v43 }
 0x2f7   : > { %v3602_v20 = vpop.xlane.xlu1 %1688  ;;  %v2147_v37 = vsel %vm2121_vm3, %v1972_v11, %v2146_v51 }
 0x2f8   : > { %v3604_v13 = vpop.xlane.xlu0 %1733  ;;  %v1976_v42 = vrot.slane %v3602_v20, %v3528_v62 }
 0x2f9   : > { %v2036_v20 = vrot.slane %v3604_v13, %v3528_v62 }
 0x2fb   : > { %v3606_v14 = vpop.xlane.xlu1 %1736 }
 0x2fc   : > { %v3608_v19 = vpop.xlane.xlu0 %1781 }
 0x2ff   : > { %v3610_v41 = vpop.xlane.xlu1 %1784 }
 0x300   : > { %v1713_v58 = vpop.xlane.xlu0 %1712  ;;  %v2104_v34 = vrot.slane %v3610_v41, %v3528_v62 }
 0x301   : > { %v2008_v9 = vrot.slane %v1713_v58, %v3528_v62 }
 0x303   : > { %v1716_v27 = vpop.xlane.xlu1 %1715  ;;  %v2155_v54 = vsel %vm2123_vm4, %v2008_v9, %v2154_v52  ;;  %v2100_v9 = vrot.slane %v3608_v19, %v3528_v62 }
 0x304   : > { %v1761_v35 = vpop.xlane.xlu0 %1760  ;;  %v2012_v50 = vrot.slane %v1716_v27, %v3528_v62 }
 0x305   : > { %v2072_v59 = vrot.slane %v1761_v35, %v3528_v62  ;;  %v2148_v35 = vsel %vm2123_vm4, %v1976_v42, %v2147_v37  ;;  %v2175_v12 = vsel %vm2121_vm3, %v2100_v9, %v2174_v17 }
 0x306   : > { %v2156_v61 = vsel %vm2125_vm5, %v2012_v50, %v2155_v54 }
 0x307   : > { %v1764_v28 = vpop.xlane.xlu1 %1763  ;;  %v2169_v45 = vsel %vm2123_vm4, %v2072_v59, %v2168_v47 }
 0x308   : > { %v1692_v15 = vpop.xlane.xlu0 %1691  ;;  %v2076_v60 = vrot.slane %v1764_v28, %v3528_v62  ;;  %v2040_v28 = vrot.slane %v3606_v14, %v3528_v62 }
 0x309   : > { %v1980_v36 = vrot.slane %v1692_v15, %v3528_v62 }
 0x30a   : > { %v2170_v58 = vsel %vm2125_vm5, %v2076_v60, %v2169_v45 }
 0x30b   : > { %v3612_v57 = vpop.xlane.xlu1 %1694  ;;  %v2149_v21 = vsel %vm2125_vm5, %v1980_v36, %v2148_v35 }
 0x30c   : > { %v3614_v25 = vpop.xlane.xlu0 %1739  ;;  %v1984_v40 = vrot.slane %v3612_v57, %v3528_v62 }
 0x30d   : > { %v2044_v13 = vrot.slane %v3614_v25, %v3528_v62  ;;  %v2161_v25 = vsel %vm2121_vm3, %v2036_v20, %v2160_v53 }
 0x30e   : > { %v2150_v14 = vsel %vm2127_vm6, %v1984_v40, %v2149_v21  ;;  %v2162_v4 = vsel %vm2123_vm4, %v2040_v28, %v2161_v25 }
 0x30f   : > { %v3616_v7 = vpop.xlane.xlu1 %1742  ;;  %v2163_v2 = vsel %vm2125_vm5, %v2044_v13, %v2162_v4 }
 0x310   : > { %v3620_v8 = vpop.xlane.xlu0 %1787  ;;  %v2048_v39 = vrot.slane %v3616_v7, %v3528_v62 }
 0x311   : > { %v2108_v50 = vrot.slane %v3620_v8, %v3528_v62 }
 0x312   : > { %v2164_v49 = vsel %vm2127_vm6, %v2048_v39, %v2163_v2 }
 0x313   : > { %v3627_v38 = vpop.xlane.xlu1 %1790 }
 0x314   : > { %v1719_v0 = vpop.xlane.xlu0 %1718  ;;  %v2112_v41 = vrot.slane %v3627_v38, %v3528_v62 }
 0x315   : > { %v2016_v24 = vrot.slane %v1719_v0, %v3528_v62  ;;  %v2176_v0 = vsel %vm2123_vm4, %v2104_v34, %v2175_v12 }
 0x316   : > { %v2177_v8 = vsel %vm2125_vm5, %v2108_v50, %v2176_v0 }
 0x317   : > { %v1722_v55 = vpop.xlane.xlu1 %1721  ;;  %v2157_v30 = vsel %vm2127_vm6, %v2016_v24, %v2156_v61  ;;  %v2178_v31 = vsel %vm2127_vm6, %v2112_v41, %v2177_v8 }
 0x318   : > { %v2020_v16 = vrot.slane %v1722_v55, %v3528_v62  ;;  %v1767_v48 = vpop.xlane.xlu0 %1766 }
 0x319   : > { %v2080_v18 = vrot.slane %v1767_v48, %v3528_v62 }
 0x31a   : > { %v2158_v46 = vsel %vm2129_vm7, %v2020_v16, %v2157_v30 }
 0x31b   : > { %2193 = vst.msk [vmem:[%s3547_s30 + $0x20] sm:$0xff] %vm2188_vm8, %v2158_v46  ;;  %v1770_v32 = vpop.xlane.xlu1 %1769  ;;  %v2171_v15 = vsel %vm2127_vm6, %v2080_v18, %v2170_v58 }
 0x31c   : > { %v2084_v27 = vrot.slane %v1770_v32, %v3528_v62  ;;  %v1698_v57 = vpop.xlane.xlu0 %1697 }
 0x31d   : > { %v1988_v5 = vrot.slane %v1698_v57, %v3528_v62 }
 0x31e   : > { %v2172_v44 = vsel %vm2129_vm7, %v2084_v27, %v2171_v15 }
 0x31f   : > { %2195 = vst.msk [vmem:[%s3547_s30 + $0x30] sm:$0xff] %vm2188_vm8, %v2172_v44  ;;  %v2151_v10 = vsel %vm2129_vm7, %v1988_v5, %v2150_v14 }
 0x320   : > { %2192 = vst.msk [vmem:[%s3547_s30 + $0x18] sm:$0xff] %vm2188_vm8, %v2151_v10  ;;  %v1746_v7 = vpop.xlane.xlu0 %1745 }
 0x321   : > { %v2052_v19 = vrot.slane %v1746_v7, %v3528_v62 }
 0x323   : > { %v2165_v26 = vsel %vm2129_vm7, %v2052_v19, %v2164_v49 }
 0x324   : > { %2194 = vst.msk [vmem:[%s3547_s30 + $0x28] sm:$0xff] %vm2188_vm8, %v2165_v26  ;;  %v1794_v56 = vpop.xlane.xlu0 %1793 }
 0x325   : > { %v2116_v52 = vrot.slane %v1794_v56, %v3528_v62 }
 0x327   : > { %v2179_v24 = vsel %vm2129_vm7, %v2116_v52, %v2178_v31 }
 0x328   : > { %2196 = vst.msk [vmem:[%s3547_s30 + $0x38] sm:$0xff] %vm2188_vm8, %v2179_v24 }
 0x329 PF: > { %p11_p8 = scmp.ge.s32.totalorder %s2440_s11, 6   ;;  %s3856_s6 = smov %s2386_s7 }
 0x32a   : > { %s3857_s7 = smov %s2390_s8  ;;  %s3858_s8 = smov %s2450_s14 }
 0x32b   : > { %s3859_s9 = smov %s2440_s11  ;;  %13 = sbr.rel (!%p11_p8) target bundleno = 3 (0x3), region = 64 }
 0x332   :  { %2219 = vsyncpa [#allocation3], 1 }
 0x333   :  { %2221 = vsyncpa [#allocation3 + $0x1], 1 }

</bundles_post_ra>
